<compile_context>
chip_gen: v5e
topology: v5e:2x2
jax: 0.10.0
libtpu: 0.0.40
codegen_flags: <defaults>
</compile_context>

<pallas_src>
import jax
import jax.numpy as jnp
from jax.experimental import pallas as pl
from jax.experimental.pallas import tpu as pltpu


def _round_up(x, m):
    return ((x + m - 1) // m) * m


def _linear_kernel_single_k(x_ref, w_ref, b_ref, o_ref):
    """One (bb, bn) output tile, whole K resident in VMEM (no reduction loop)."""
    acc = jnp.dot(x_ref[...], w_ref[...], preferred_element_type=jnp.float32)
    o_ref[...] = (acc + b_ref[...].astype(jnp.float32)).astype(o_ref.dtype)


def _linear_kernel_tiled_k(x_ref, w_ref, b_ref, o_ref, acc_ref):
    """One (bb, bn) output tile; feature (K) axis is the last grid dim."""
    k = pl.program_id(2)

    @pl.when(k == 0)
    def _():
        acc_ref[...] = jnp.zeros_like(acc_ref)

    acc_ref[...] += jnp.dot(
        x_ref[...], w_ref[...], preferred_element_type=jnp.float32
    )

    @pl.when(k == pl.num_programs(2) - 1)
    def _():
        o_ref[...] = (acc_ref[...] + b_ref[...].astype(jnp.float32)).astype(o_ref.dtype)


def classifier_1fc(x, w, b, *, block_b=256, block_n=512, block_k=512,
                   compute_dtype=None):
    """Forward of Classifier_1fc (droprate=0.0): y = x @ w + b.

    x: (..., C), w: (C, N), b: (N,)  ->  y: (..., N)
    """
    # TODO(synk): droprate != 0.0 (training-mode dropout) not implemented; the
    # reference module defaults to droprate=0.0, which is an identity here.
    orig_shape = x.shape
    C = orig_shape[-1]
    Cw, N = w.shape
    assert C == Cw, (C, Cw)
    out_dtype = x.dtype

    x2 = x.reshape(-1, C)
    B = x2.shape[0]

    # Optional low-precision MXU inputs (f32 accumulation kept in-kernel).
    if compute_dtype is not None:
        x2 = x2.astype(compute_dtype)
        w = w.astype(compute_dtype)

    # --- tile sizes -------------------------------------------------------
    block_b = max(8, _round_up(block_b, 8))
    block_n = max(128, _round_up(block_n, 128))
    block_k = max(128, _round_up(block_k, 128))

    # Batch tile: cap at block_b; partial last block handled by Pallas (cdiv).
    bb = B if B <= block_b else block_b

    # Lane-dense output: pad N up to a multiple of 128 (and of the N tile).
    bn = min(block_n, _round_up(N, 128))
    N_pad = _round_up(N, bn)

    # K tile: keep weight/x tiles VMEM-resident; zero-pad C so padding does
    # not corrupt the reduction.
    if C <= block_k:
        bk, C_pad = C, C
    else:
        bk = block_k
        C_pad = _round_up(C, bk)

    # --- wrapper-side padding (zeros along K are exact; N pad sliced off) ---
    if C_pad != C:
        x2 = jnp.pad(x2, ((0, 0), (0, C_pad - C)))
        w = jnp.pad(w, ((0, C_pad - C), (0, 0)))
    if N_pad != N:
        w = jnp.pad(w, ((0, 0), (0, N_pad - N)))
        b = jnp.pad(b, ((0, N_pad - N),))
    b2 = b.reshape(1, N_pad)

    nb = pl.cdiv(B, bb)
    nn = N_pad // bn
    nk = C_pad // bk

    # --- VMEM budget (double-buffered inputs/outputs + f32 accumulator) ----
    in_item = jnp.dtype(x2.dtype).itemsize
    b_item = jnp.dtype(b2.dtype).itemsize
    out_item = jnp.dtype(out_dtype).itemsize
    tile_bytes = (2 * bb * bk * in_item      # x tile
                  + 2 * bk * bn * in_item    # w tile
                  + 2 * bn * b_item          # bias tile
                  + 2 * bb * bn * out_item   # output tile
                  + bb * bn * 4)             # accumulator scratch
    vmem_limit = min(max(2 * tile_bytes + (4 << 20), 8 << 20), 48 << 20)

    cost = pl.CostEstimate(
        flops=2 * B * C_pad * N_pad,
        transcendentals=0,
        bytes_accessed=in_item * (B * C_pad + C_pad * N_pad) + out_item * B * N_pad,
    )

    if nk == 1:
        # Fast path: whole reduction resident in one VMEM tile (common for
        # classifier heads). No accumulator scratch, no reduction grid axis.
        out = pl.pallas_call(
            _linear_kernel_single_k,
            out_shape=jax.ShapeDtypeStruct((B, N_pad), out_dtype),
            grid=(nb, nn),
            in_specs=[
                pl.BlockSpec((bb, C_pad), lambda i, j: (i, 0)),   # x
                pl.BlockSpec((C_pad, bn), lambda i, j: (0, j)),   # w
                pl.BlockSpec((1, bn), lambda i, j: (0, j)),       # bias
            ],
            out_specs=pl.BlockSpec((bb, bn), lambda i, j: (i, j)),
            compiler_params=pltpu.CompilerParams(
                dimension_semantics=("parallel", "parallel"),
                vmem_limit_bytes=vmem_limit,
            ),
            cost_estimate=cost,
        )(x2, w, b2)
    else:
        out = pl.pallas_call(
            _linear_kernel_tiled_k,
            out_shape=jax.ShapeDtypeStruct((B, N_pad), out_dtype),
            grid=(nb, nn, nk),
            in_specs=[
                pl.BlockSpec((bb, bk), lambda i, j, k: (i, k)),   # x
                pl.BlockSpec((bk, bn), lambda i, j, k: (k, j)),   # w
                pl.BlockSpec((1, bn), lambda i, j, k: (0, j)),    # bias
            ],
            out_specs=pl.BlockSpec((bb, bn), lambda i, j, k: (i, j)),
            scratch_shapes=[pltpu.VMEM((bb, bn), jnp.float32)],
            compiler_params=pltpu.CompilerParams(
                dimension_semantics=("parallel", "parallel", "arbitrary"),
                vmem_limit_bytes=vmem_limit,
            ),
            cost_estimate=cost,
        )(x2, w, b2)

    y = out[:, :N]
    return y.reshape(*orig_shape[:-1], N)


if __name__ == "__main__":
    # Classifier_1fc(n_channels=32, n_classes=8, droprate=0.0)
    n_channels, n_classes = 32, 8
    batch = 8

    key = jax.random.PRNGKey(0)
    kx, kw, kb = jax.random.split(key, 3)

    x = jax.random.normal(kx, (batch, n_channels), dtype=jnp.float32)
    # deterministic synthetic Linear params (PyTorch-style uniform init range)
    bound = 1.0 / (n_channels ** 0.5)
    w = jax.random.uniform(kw, (n_channels, n_classes), jnp.float32, -bound, bound)
    b = jax.random.uniform(kb, (n_classes,), jnp.float32, -bound, bound)

    y = classifier_1fc(x, w, b)
    y = jax.block_until_ready(y)

    # correctness check vs plain-JAX reference of nn.Linear forward
    y_ref = x @ w + b
    assert y.shape == (batch, n_classes)
    assert jnp.allclose(y, y_ref, atol=1e-5, rtol=1e-5)

    # also exercise the K-tiled (nk > 1) path at a slightly larger shape
    C2, N2, B2 = 320, 40, 24
    k2x, k2w, k2b = jax.random.split(jax.random.PRNGKey(1), 3)
    x2 = jax.random.normal(k2x, (B2, C2), dtype=jnp.float32)
    w2 = jax.random.normal(k2w, (C2, N2), dtype=jnp.float32) * 0.05
    b2 = jax.random.normal(k2b, (N2,), dtype=jnp.float32)
    y2 = jax.block_until_ready(classifier_1fc(x2, w2, b2, block_k=128))
    y2_ref = x2 @ w2 + b2
    assert jnp.allclose(y2, y2_ref, atol=1e-4, rtol=1e-4)

    print("KERNEL_OK")
</pallas_src>

<mosaic_0001>
module attributes {stable_mosaic.version = 11 : i64} {
  func.func @_linear_kernel_single_k(%arg0: i32, %arg1: i32, %arg2: memref<8x32xf32, #tpu.memory_space<vmem>>, %arg3: memref<32x128xf32, #tpu.memory_space<vmem>>, %arg4: memref<1x128xf32, #tpu.memory_space<vmem>>, %arg5: memref<8x128xf32, #tpu.memory_space<vmem>>) attributes {dimension_semantics = [#tpu.dimension_semantics<parallel>, #tpu.dimension_semantics<parallel>], iteration_bounds = array<i64: 1, 1>, scalar_prefetch = 0 : i64, scratch_operands = 0 : i64, tpu.core_type = #tpu.core_type<tc>, window_params = [{transform_indices = @transform_0, window_bounds = array<i64: 8, 32>}, {transform_indices = @transform_1, window_bounds = array<i64: 32, 128>}, {transform_indices = @transform_2, window_bounds = array<i64: 1, 128>}, {transform_indices = @transform_3, window_bounds = array<i64: 8, 128>}]} {
    %c0 = arith.constant 0 : index
    %c0_0 = arith.constant 0 : index
    %0 = vector.load %arg2[%c0, %c0_0] : memref<8x32xf32, #tpu.memory_space<vmem>>, vector<8x32xf32>
    %c0_1 = arith.constant 0 : index
    %c0_2 = arith.constant 0 : index
    %1 = vector.load %arg3[%c0_1, %c0_2] : memref<32x128xf32, #tpu.memory_space<vmem>>, vector<32x128xf32>
    %cst = arith.constant dense<0.000000e+00> : vector<8x128xf32>
    %2 = tpu.matmul %0, %1, %cst {dimension_numbers = #tpu.dot_dimension_numbers<[1], [0], [0], [1], [0, 0, 1, 1], [], []>} : vector<8x32xf32>, vector<32x128xf32>, vector<8x128xf32> -> vector<8x128xf32>
    %c0_3 = arith.constant 0 : index
    %c0_4 = arith.constant 0 : index
    %3 = vector.load %arg4[%c0_3, %c0_4] : memref<1x128xf32, #tpu.memory_space<vmem>>, vector<1x128xf32>
    %4 = vector.broadcast %3 : vector<1x128xf32> to vector<8x128xf32>
    %5 = arith.addf %2, %4 : vector<8x128xf32>
    %c0_5 = arith.constant 0 : index
    %c0_6 = arith.constant 0 : index
    %6 = vector.load %arg5[%c0_5, %c0_6] : memref<8x128xf32, #tpu.memory_space<vmem>>, vector<8x128xf32>
    tpu.vector_store %arg5[%c0_5, %c0_6], %5 {strides = array<i32>} : memref<8x128xf32, #tpu.memory_space<vmem>>, vector<8x128xf32>,
    return
  }
  func.func @transform_0(%arg0: i32, %arg1: i32) -> (i32, i32) {
    %c0_i32 = arith.constant 0 : i32
    %c0_i32_0 = arith.constant 0 : i32
    return %arg0, %c0_i32 : i32, i32
  }
  func.func @transform_1(%arg0: i32, %arg1: i32) -> (i32, i32) {
    %c0_i32 = arith.constant 0 : i32
    %c0_i32_0 = arith.constant 0 : i32
    return %c0_i32, %arg1 : i32, i32
  }
  func.func @transform_2(%arg0: i32, %arg1: i32) -> (i32, i32) {
    %c0_i32 = arith.constant 0 : i32
    %c0_i32_0 = arith.constant 0 : i32
    return %c0_i32, %arg1 : i32, i32
  }
  func.func @transform_3(%arg0: i32, %arg1: i32) -> (i32, i32) {
    %c0_i32 = arith.constant 0 : i32
    return %arg0, %arg1 : i32, i32
  }
}

</mosaic_0001>

<bundles_post_ra>
// kernel: tpu_custom_call.1
= control target key start
LH: loop header
LB: loop body
LE: loop exit
PB: predicated region body
PF: predicated region fallthrough
CT: control target
= control target key end

     0   :  { %8 = vsyncpa [#allocation3], 0  ;;  %s219_s0 = inlined_call_operand.hbm [shape: f32[8,32], index: 0, kind: input, shape index: {}]   ;;  %s220_s1 = inlined_call_operand.hbm [shape: f32[32,128], index: 1, kind: input, shape index: {}]   ;;  %s221_s2 = inlined_call_operand.vmem [shape: f32[1,128], index: 2, kind: input, shape index: {}]   ;;  %s222_s3 = inlined_call_operand.hbm [shape: f32[8,128], index: 3, kind: output, shape index: {}]  }
   0x1   :  { %9 = vsyncpa [#allocation6], 0 }
   0x2   :  { %10 = vsyncpa [#allocation4], 0  ;;  %s16_s14 = sshll.u32 %s219_s0, 4  ;;  %s182_s15 = smov [#allocation2]   ;;  %s17_s14 = int_to_ptr.hbm [resolvable:$true] %s16_s14 }
   0x3   :  { %s18_s16 = sshll.u32 %s182_s15, 4  ;;  %s26_s19 = sshll.u32 %s220_s1, 4  ;;  %s19_s16 = int_to_ptr.vmem [resolvable:$true] %s18_s16  ;;  %s27_s19 = int_to_ptr.hbm [resolvable:$true] %s26_s19 }
   0x4   :  { %21 = dma.hbm_to_vmem [thread:$0]  %s17_s14, 128, %s19_s16, [#allocation3]  }
   0x5   :  { %s183_s20 = smov [#allocation5]   ;;  %s184_s22 = smov 128  }
   0x6   :  { %s28_s21 = sshll.u32 %s183_s20, 4  ;;  %s185_s23 = smov 8   ;;  %s29_s21 = int_to_ptr.vmem [resolvable:$true] %s28_s21 }
   0x7   :  { %34 = dma.hbm_to_vmem [thread:$0]  %s27_s19, 512, %s29_s21, [#allocation6], %s184_s22, %s184_s22, %s185_s23  }
   0x8   :  { %176 = dma.done.wait [#allocation3], 128  }
   0x9   :  { %177 = vsyncadd [#allocation3], 4294967168 }
   0xa   :  { %178 = dma.done.wait [#allocation6], 512  }
   0xb   :  { %179 = vsyncadd [#allocation6], 4294966784  ;;  %v49_v0 = vld [vmem:[#allocation5 + $0x18] sm:$0xff]  ;;  %v48_v1 = vld [vmem:[#allocation5 + $0x10] sm:$0xff]  ;;  %vm54_vm0 = vcmask 261120   ;;  %s186_s24 = smov [#allocation7]  }
   0xc   :  { %70 = vmatpush.msra.mxu0 %v49_v0  ;;  %v47_v2 = vld [vmem:[#allocation5 + $0x8] sm:$0xff]  ;;  %v46_v3 = vld [vmem:[#allocation5] sm:$0xff]  ;;  %v45_v4 = vld [vmem:[#allocation2] sm:$0xff]  ;;  %s84_s25 = sshll.u32 %s186_s24, 4  ;;  %s86_s28 = sshll.u32 %s222_s3, 4  ;;  %s85_s25 = int_to_ptr.vmem [resolvable:$true] %s84_s25  ;;  %s87_s28 = int_to_ptr.hbm [resolvable:$true] %s86_s28 }
   0xd   :  { %v103_v5 = vld [vmem:[%s221_s2] ss:$0 sm:$0xff] }
   0xe   :  { %71 = vmatpush.msra.mxu0 %v48_v1 }
  0x10   :  { %72 = vmatpush.msra.mxu0 %v47_v2 }
  0x12   :  { %73 = vmatpush.msra.mxu0 %v46_v3 }
  0x13   :  { %97 = vmatmul.msk.f32.vlgmr.msra.gmra.mxu0 %vm54_vm0, %v45_v4 }
  0x90   :  { %v75_v6 = vpop.f32.mrf.mxu0 }
  0x91   :  { %v76_v7 = vadd.f32 %v103_v5, %v75_v6 }
  0x93   :  { %78 = vst [vmem:[#allocation7] sm:$0xff] %v76_v7 }
  0x94   :  { %89 = dma.vmem_to_hbm [thread:$0]  %s85_s25, 128, %s87_s28, [#allocation4]  }
  0x95   :  { %180 = dma.done.wait [#allocation4], 128  }
  0x96   :  { %181 = vsyncadd [#allocation4], 4294967168 }
  0x97   :  { %94 = vsyncpa [#allocation3], 1 }
  0x98   :  { %95 = vsyncpa [#allocation6], 1 }
  0x99   :  { %96 = vsyncpa [#allocation4], 1 }

</bundles_post_ra>
